<compile_context>
chip_gen: v7x
topology: tpu7x:2x2x1
jax: 0.10.0
libtpu: 0.0.40
codegen_flags: <defaults>
</compile_context>

<pallas_src>
import jax
import jax.numpy as jnp
from jax.experimental import pallas as pl
from jax.experimental.pallas import tpu as pltpu


def _adv_net_kernel(x_ref, w1_ref, b1_ref, w2_ref, b2_ref, out_ref):
    # Layer 1: x @ w1 on the MXU (bf16 operands, f32 accumulation).
    h = jnp.dot(x_ref[...], w1_ref[...], preferred_element_type=jnp.float32)
    # Bias-add + ReLU in f32 on the VPU (v5e has no bf16 VALU path).
    h = jnp.maximum(h + b1_ref[...], 0.0)
    # Dropout(p=0.1) in eval mode is identity.
    # Layer 2: cast activations back to the weight dtype for the MXU; the
    # class axis is padded to a multiple of 128 -> lane-dense result tile.
    o = jnp.dot(h.astype(w2_ref.dtype), w2_ref[...],
                preferred_element_type=jnp.float32)
    out_ref[...] = (o + b2_ref[...]).astype(out_ref.dtype)


def adversarial_network_forward(x, w1, b1, w2, b2, *, block_b=128, use_bf16=True):
    """Fused forward:  relu(x @ w1 + b1) @ w2 + b2.

    x:  (B, in_feature)        float32
    w1: (in_feature, hidden)   b1: (hidden,)
    w2: (hidden, num_classes)  b2: (num_classes,)
    returns (B, num_classes)   float32
    """
    B, F = x.shape
    H = w1.shape[1]
    C = w2.shape[1]

    # --- lane-dense padding of the class axis (e.g. 4 -> 128) --------------
    C_pad = ((C + 127) // 128) * 128

    # --- batch tile: multiple of 8 sublanes, capped at block_b --------------
    TB = min(block_b, ((B + 7) // 8) * 8)
    TB = max(8, ((TB + 7) // 8) * 8)
    B_pad = ((B + TB - 1) // TB) * TB

    in_dtype = jnp.bfloat16 if use_bf16 else x.dtype

    # Operand prep (plain XLA): pad batch rows with zeros, pad w2/b2 columns
    # with zeros, cast matmul operands to bf16.  Biases stay f32.
    x_p = jnp.zeros((B_pad, F), dtype=in_dtype).at[:B].set(x.astype(in_dtype))
    w1_c = w1.astype(in_dtype)
    w2_p = jnp.zeros((H, C_pad), dtype=in_dtype).at[:, :C].set(w2.astype(in_dtype))
    b1_2d = b1.reshape(1, H).astype(jnp.float32)
    b2_2d = jnp.zeros((1, C_pad), dtype=jnp.float32).at[:, :C].set(
        b2.astype(jnp.float32))

    grid = (B_pad // TB,)

    out_padded = pl.pallas_call(
        _adv_net_kernel,
        out_shape=jax.ShapeDtypeStruct((B_pad, C_pad), jnp.float32),
        grid_spec=pltpu.PrefetchScalarGridSpec(
            num_scalar_prefetch=0,
            grid=grid,
            in_specs=[
                # Activation tile marches along the batch grid axis.
                pl.BlockSpec((TB, F), lambda i: (i, 0)),
                # Weights / biases: constant block index -> resident in VMEM
                # across all batch tiles (fetched from HBM once per call).
                pl.BlockSpec((F, H), lambda i: (0, 0)),
                pl.BlockSpec((1, H), lambda i: (0, 0)),
                pl.BlockSpec((H, C_pad), lambda i: (0, 0)),
                pl.BlockSpec((1, C_pad), lambda i: (0, 0)),
            ],
            out_specs=pl.BlockSpec((TB, C_pad), lambda i: (i, 0)),
        ),
        compiler_params=pltpu.CompilerParams(
            # Batch tiles are independent -> megacore sharding on v7x.
            dimension_semantics=("parallel",),
            # Explicit, modest budget: fits comfortably inside v7x's 64 MiB
            # VMEM while leaving headroom (v5e/v6e have 128 MiB).
            vmem_limit_bytes=32 * 1024 * 1024,
        ),
    )(x_p, w1_c, b1_2d, w2_p, b2_2d)

    # Slice away batch / class padding in the wrapper (cheap XLA slice).
    return out_padded[:B, :C]


def _xavier_uniform(key, fan_in, fan_out, dtype=jnp.float32):
    # Matches nn.init.xavier_uniform_ (gain=1): U(-a, a), a = sqrt(6/(fan_in+fan_out))
    a = (6.0 / (fan_in + fan_out)) ** 0.5
    return jax.random.uniform(key, (fan_in, fan_out), dtype=dtype, minval=-a, maxval=a)


if __name__ == "__main__":
    # Module hyper-params (small, consistent with the forward):
    in_feature, hidden_size, num_classes = 32, 32, 4
    batch = 8

    key = jax.random.PRNGKey(0)
    k_x, k_w1, k_w2 = jax.random.split(key, 3)

    x = jax.random.normal(k_x, (batch, in_feature), dtype=jnp.float32)
    # PyTorch Linear weight is (out, in); xavier_uniform is symmetric in fan
    # ordering, so we directly build (in, out) matrices for the x @ W layout.
    w1 = _xavier_uniform(k_w1, in_feature, hidden_size)
    b1 = jnp.zeros((hidden_size,), dtype=jnp.float32)
    w2 = _xavier_uniform(k_w2, hidden_size, num_classes)
    b2 = jnp.zeros((num_classes,), dtype=jnp.float32)

    out = adversarial_network_forward(x, w1, b1, w2, b2)
    out = jax.block_until_ready(out)
    assert out.shape == (batch, num_classes)

    # Reference 1: same bf16-operand / f32-accumulate arithmetic (tight check).
    xb, w1b, w2b = (t.astype(jnp.bfloat16) for t in (x, w1, w2))
    h_ref = jnp.maximum(
        jnp.dot(xb, w1b, preferred_element_type=jnp.float32) + b1, 0.0)
    ref_bf16 = jnp.dot(h_ref.astype(jnp.bfloat16), w2b,
                       preferred_element_type=jnp.float32) + b2
    assert jnp.allclose(out, ref_bf16, atol=1e-3, rtol=1e-3)

    # Reference 2: full-f32 module semantics (loose check for bf16 rounding).
    ref_f32 = jnp.maximum(x @ w1 + b1, 0.0) @ w2 + b2
    assert jnp.allclose(out, ref_f32, atol=5e-2, rtol=5e-2)

    print("KERNEL_OK")
</pallas_src>

<mosaic_0001>
module attributes {stable_mosaic.version = 11 : i64} {
  func.func @_adv_net_kernel(%arg0: i32, %arg1: memref<8x32xbf16, #tpu.memory_space<vmem>>, %arg2: memref<32x32xbf16, #tpu.memory_space<vmem>>, %arg3: memref<1x32xf32, #tpu.memory_space<vmem>>, %arg4: memref<32x128xbf16, #tpu.memory_space<vmem>>, %arg5: memref<1x128xf32, #tpu.memory_space<vmem>>, %arg6: memref<8x128xf32, #tpu.memory_space<vmem>>) attributes {dimension_semantics = [#tpu.dimension_semantics<parallel>], iteration_bounds = array<i64: 1>, scalar_prefetch = 0 : i64, scratch_operands = 0 : i64, tpu.core_type = #tpu.core_type<tc>, window_params = [{transform_indices = @transform_0, window_bounds = array<i64: 8, 32>}, {pipeline_mode = #tpu.pipeline_mode<synchronous>, transform_indices = @transform_1, window_bounds = array<i64: 32, 32>}, {pipeline_mode = #tpu.pipeline_mode<synchronous>, transform_indices = @transform_2, window_bounds = array<i64: 1, 32>}, {pipeline_mode = #tpu.pipeline_mode<synchronous>, transform_indices = @transform_3, window_bounds = array<i64: 32, 128>}, {pipeline_mode = #tpu.pipeline_mode<synchronous>, transform_indices = @transform_4, window_bounds = array<i64: 1, 128>}, {transform_indices = @transform_5, window_bounds = array<i64: 8, 128>}]} {
    %c0 = arith.constant 0 : index
    %c0_0 = arith.constant 0 : index
    %0 = vector.load %arg1[%c0, %c0_0] : memref<8x32xbf16, #tpu.memory_space<vmem>>, vector<8x32xbf16>
    %c0_1 = arith.constant 0 : index
    %c0_2 = arith.constant 0 : index
    %1 = vector.load %arg2[%c0_1, %c0_2] : memref<32x32xbf16, #tpu.memory_space<vmem>>, vector<32x32xbf16>
    %cst = arith.constant dense<0.000000e+00> : vector<8x32xf32>
    %2 = tpu.matmul %0, %1, %cst {dimension_numbers = #tpu.dot_dimension_numbers<[1], [0], [0], [1], [0, 0, 1, 1], [], []>} : vector<8x32xbf16>, vector<32x32xbf16>, vector<8x32xf32> -> vector<8x32xf32>
    %c0_3 = arith.constant 0 : index
    %c0_4 = arith.constant 0 : index
    %3 = vector.load %arg3[%c0_3, %c0_4] : memref<1x32xf32, #tpu.memory_space<vmem>>, vector<1x32xf32>
    %4 = vector.broadcast %3 : vector<1x32xf32> to vector<8x32xf32>
    %5 = arith.addf %2, %4 : vector<8x32xf32>
    %cst_5 = arith.constant 0.000000e+00 : f32
    %6 = vector.broadcast %cst_5 : f32 to vector<8x32xf32>
    %7 = arith.maximumf %5, %6 : vector<8x32xf32>
    %8 = arith.truncf %7 : vector<8x32xf32> to vector<8x32xbf16>
    %c0_6 = arith.constant 0 : index
    %c0_7 = arith.constant 0 : index
    %9 = vector.load %arg4[%c0_6, %c0_7] : memref<32x128xbf16, #tpu.memory_space<vmem>>, vector<32x128xbf16>
    %cst_8 = arith.constant dense<0.000000e+00> : vector<8x128xf32>
    %10 = tpu.matmul %8, %9, %cst_8 {dimension_numbers = #tpu.dot_dimension_numbers<[1], [0], [0], [1], [0, 0, 1, 1], [], []>} : vector<8x32xbf16>, vector<32x128xbf16>, vector<8x128xf32> -> vector<8x128xf32>
    %c0_9 = arith.constant 0 : index
    %c0_10 = arith.constant 0 : index
    %11 = vector.load %arg5[%c0_9, %c0_10] : memref<1x128xf32, #tpu.memory_space<vmem>>, vector<1x128xf32>
    %12 = vector.broadcast %11 : vector<1x128xf32> to vector<8x128xf32>
    %13 = arith.addf %10, %12 : vector<8x128xf32>
    %c0_11 = arith.constant 0 : index
    %c0_12 = arith.constant 0 : index
    %14 = vector.load %arg6[%c0_11, %c0_12] : memref<8x128xf32, #tpu.memory_space<vmem>>, vector<8x128xf32>
    tpu.vector_store %arg6[%c0_11, %c0_12], %13 {strides = array<i32>} : memref<8x128xf32, #tpu.memory_space<vmem>>, vector<8x128xf32>,
    return
  }
  func.func @transform_0(%arg0: i32) -> (i32, i32) {
    %c0_i32 = arith.constant 0 : i32
    %c0_i32_0 = arith.constant 0 : i32
    return %arg0, %c0_i32 : i32, i32
  }
  func.func @transform_1(%arg0: i32) -> (i32, i32) {
    %c0_i32 = arith.constant 0 : i32
    %c0_i32_0 = arith.constant 0 : i32
    %c0_i32_1 = arith.constant 0 : i32
    return %c0_i32, %c0_i32_0 : i32, i32
  }
  func.func @transform_2(%arg0: i32) -> (i32, i32) {
    %c0_i32 = arith.constant 0 : i32
    %c0_i32_0 = arith.constant 0 : i32
    %c0_i32_1 = arith.constant 0 : i32
    return %c0_i32, %c0_i32_0 : i32, i32
  }
  func.func @transform_3(%arg0: i32) -> (i32, i32) {
    %c0_i32 = arith.constant 0 : i32
    %c0_i32_0 = arith.constant 0 : i32
    %c0_i32_1 = arith.constant 0 : i32
    return %c0_i32, %c0_i32_0 : i32, i32
  }
  func.func @transform_4(%arg0: i32) -> (i32, i32) {
    %c0_i32 = arith.constant 0 : i32
    %c0_i32_0 = arith.constant 0 : i32
    %c0_i32_1 = arith.constant 0 : i32
    return %c0_i32, %c0_i32_0 : i32, i32
  }
  func.func @transform_5(%arg0: i32) -> (i32, i32) {
    %c0_i32 = arith.constant 0 : i32
    %c0_i32_0 = arith.constant 0 : i32
    return %arg0, %c0_i32 : i32, i32
  }
}

</mosaic_0001>

<bundles_post_ra>
// kernel: tpu_custom_call.1
= control target key start
LH: loop header
LB: loop body
LE: loop exit
PB: predicated region body
PF: predicated region fallthrough
CT: control target
= control target key end

     0   :  { %10 = vsyncpa [#allocation3], 0  ;;  %s448_s0 = inlined_call_operand.hbm [shape: bf16[8,32], index: 0, kind: input, shape index: {}]   ;;  %s449_s1 = inlined_call_operand.hbm [shape: bf16[32,32], index: 1, kind: input, shape index: {}]   ;;  %s450_s2 = inlined_call_operand.vmem [shape: f32[1,32], index: 2, kind: input, shape index: {}]   ;;  %s451_s3 = inlined_call_operand.hbm [shape: bf16[32,128], index: 3, kind: input, shape index: {}]   ;;  %s452_s4 = inlined_call_operand.vmem [shape: f32[1,128], index: 4, kind: input, shape index: {}]   ;;  %s453_s5 = inlined_call_operand.hbm [shape: f32[8,128], index: 5, kind: output, shape index: {}]  }
   0x1   :  { %11 = vsyncpa [#allocation6], 0 }
   0x2   :  { %12 = vsyncpa [#allocation4], 0  ;;  %s350_s18 = smov [#allocation5]   ;;  %s256_s22 = scalar_lea.hbm %s449_s1, 256 }
   0x3   :  { %s28_s19 = sshll.u32 %s350_s18, 4  ;;  %p257_p0 = scmp.ne.s32.totalorder %s449_s1, %s256_s22  ;;  %s29_s19 = int_to_ptr.vmem [resolvable:$true] %s28_s19 }
   0x4   :  { %p260_p1 = scmp.lt.u32.totalorder %s256_s22, %s449_s1 }
   0x6   :  { %p262_p2 = pnand %p260_p1, %p257_p0 }
   0x8   :  { %265 = shalt.err (!%p262_p2)
}
   0x9   :  { %s266_s27 = scalar_lea.vmem %s29_s19, 256  ;;  %p271_p4 = scmp.lt.s32.totalorder %s29_s19, %s29_s19 }
   0xa   :  { %p267_p3 = scmp.ne.s32.totalorder %s29_s19, %s266_s27  ;;  %p272_p5 = scmp.lt.s32.totalorder %s266_s27, %s266_s27 }
   0xc   :  { %p273_p6 = por %p272_p5, %p271_p4 }
   0xe   :  { %p274_p7 = pnand %p273_p6, %p267_p3 }
  0x10   :  { %277 = shalt.err (!%p274_p7)
}
  0x11   :  { %s351_s28 = smov 64   ;;  %s352_s29 = smov 4  }
  0x12   :  { %34 = dma.hbm_to_vmem [thread:$0]  %s449_s1, 256, %s29_s19, [#allocation6], %s351_s28, %s351_s28, %s352_s29  }
  0x13   :  { %s353_s7 = smov [#allocation2]   ;;  %s354_s9 = smov [#allocation7]  }
  0x14   :  { %s19_s8 = sshll.u32 %s353_s7, 4  ;;  %s42_s10 = sshll.u32 %s354_s9, 4  ;;  %s20_s8 = int_to_ptr.vmem [resolvable:$true] %s19_s8  ;;  %s43_s10 = int_to_ptr.vmem [resolvable:$true] %s42_s10 }
  0x15   :  { %s278_s13 = scalar_lea.hbm %s448_s0, 64 }
  0x16   :  { %p279_p8 = scmp.ne.s32.totalorder %s448_s0, %s278_s13  ;;  %p282_p9 = scmp.lt.u32.totalorder %s278_s13, %s448_s0 }
  0x18   :  { %p284_p10 = pnand %p282_p9, %p279_p8 }
  0x1a   :  { %287 = shalt.err (!%p284_p10)
}
  0x1b   :  { %s288_s1 = scalar_lea.vmem %s20_s8, 64  ;;  %p293_p12 = scmp.lt.s32.totalorder %s20_s8, %s20_s8 }
  0x1c   :  { %p289_p11 = scmp.ne.s32.totalorder %s20_s8, %s288_s1  ;;  %p294_p13 = scmp.lt.s32.totalorder %s288_s1, %s288_s1 }
  0x1e   :  { %p295_p0 = por %p294_p13, %p293_p12 }
  0x20   :  { %p296_p1 = pnand %p295_p0, %p289_p11 }
  0x22   :  { %299 = shalt.err (!%p296_p1)
}
  0x23   :  { %22 = dma.hbm_to_vmem [thread:$0]  %s448_s0, 64, %s20_s8, [#allocation3]  }
  0x24   :  { %s300_s22 = scalar_lea.hbm %s451_s3, 256 }
  0x25   :  { %p301_p2 = scmp.ne.s32.totalorder %s451_s3, %s300_s22  ;;  %p304_p3 = scmp.lt.u32.totalorder %s300_s22, %s451_s3 }
  0x27   :  { %p306_p4 = pnand %p304_p3, %p301_p2 }
  0x29   :  { %309 = shalt.err (!%p306_p4)
}
  0x2a   :  { %s310_s27 = scalar_lea.vmem %s43_s10, 256  ;;  %p315_p6 = scmp.lt.s32.totalorder %s43_s10, %s43_s10 }
  0x2b   :  { %p311_p5 = scmp.ne.s32.totalorder %s43_s10, %s310_s27  ;;  %p316_p7 = scmp.lt.s32.totalorder %s310_s27, %s310_s27 }
  0x2d   :  { %p317_p8 = por %p316_p7, %p315_p6 }
  0x2f   :  { %p318_p9 = pnand %p317_p8, %p311_p5 }
  0x31   :  { %321 = shalt.err (!%p318_p9)
}
  0x32   :  { %48 = dma.hbm_to_vmem [thread:$0]  %s451_s3, 256, %s43_s10, [#allocation6], %s351_s28, %s351_s28, %s352_s29  }
  0x33   :  { %344 = dma.done.wait [#allocation3], 64  }
  0x34   :  { %345 = vsyncadd [#allocation3], 4294967232 }
  0x35   :  { %346 = dma.done.wait [#allocation6], 512  }
  0x36   :  { %347 = vsyncadd [#allocation6], 4294966784  ;;  %v355_v0 = vmov 0.0   ;;  %vm356_vm0 = vmmov 0   ;;  %v252_v1 = vld [vmem:[#allocation5] sm:$0xff]   ;;  %v253_v2 = vld [vmem:[#allocation5 + $0x8] sm:$0xff]  }
  0x37   :  { %228 = vmatprep.subr.bf16.mxu0 %v355_v0  ;;  %232 = vmatprep.mubr.msk.bf16.mxu0 %vm356_vm0, %v355_v0  ;;  %v61_v3 = vld [vmem:[#allocation2] sm:$0xf]  ;;  %vm85_vm1 = vcmask 261120   ;;  %v254_v4 = vld [vmem:[#allocation7] sm:$0xff]   ;;  %s357_s7 = smov [#allocation8]  }
  0x38   :  { %236 = vmatprep.subr.bf16.mxu1 %v355_v0  ;;  %240 = vmatprep.mubr.msk.bf16.mxu1 %vm356_vm0, %v355_v0  ;;  %v255_v5 = vld [vmem:[#allocation7 + $0x8] sm:$0xff]   ;;  %s204_s8 = sshll.u32 %s357_s7, 4  ;;  %s205_s8 = int_to_ptr.vmem [resolvable:$true] %s204_s8 }
  0x39   :  { %229 = vmatpush3.bf16.msra.mxu0 %v252_v1  ;;  %237 = vmatpush3.bf16.msra.mxu1 %v254_v4  ;;  %v214_v6 = vld [vmem:[%s450_s2] ss:$0 sm:$0xff]  ;;  %s322_s2 = scalar_lea.vmem %s205_s8, 128  ;;  %p327_p11 = scmp.lt.s32.totalorder %s205_s8, %s205_s8 }
  0x3a   :  { %230 = vmatprep.subr.bf16.mxu0 %v355_v0  ;;  %238 = vmatprep.subr.bf16.mxu1 %v355_v0  ;;  %v218_v14 = vld [vmem:[%s452_s4] ss:$0 sm:$0xff]  ;;  %p323_p10 = scmp.ne.s32.totalorder %s205_s8, %s322_s2  ;;  %p328_p12 = scmp.lt.s32.totalorder %s322_s2, %s322_s2 }
  0x3c   :  { %p329_p13 = por %p328_p12, %p327_p11 }
  0x3d   :  { %231 = vmatpush3.bf16.msra.mxu0 %v253_v2  ;;  %239 = vmatpush3.bf16.msra.mxu1 %v255_v5 }
  0x3e   :  { %p330_p0 = pnand %p329_p13, %p323_p10 }
  0x40   :  { %233 = vmatmul.mubr.msk.bf16.vlgmr.msra.gmra.mrb[0].mxu0 %vm85_vm1, %v61_v3 }
 0x113   :  { %v123_v7 = vpop.f32.mrb[0].mxu0 }
 0x114   :  { %v124_v8 = vadd.f32 %v214_v6, %v123_v7  ;;  %v234_v9 = vpop.f32.mrb[1].mxu0 }
 0x115   :  { %v126_v10 = vpop.f32.mrb[2].mxu0 }
 0x116   :  { %v129_v11 = vmax.f32 %v124_v8, 0.0  ;;  %v235_v12 = vpop.f32.mrb[3].mxu0 }
 0x118   :  { %v130_v13 = vpack.c.bf16 %v129_v11, %v129_v11 }
 0x11a   :  { %241 = vmatmul.mubr.msk.bf16.vlgmr.msra.gmra.mrb[0].mxu1 %vm85_vm1, %v130_v13 }
 0x1ed   :  { %v191_v15 = vpop.f32.mrb[0].mxu1 }
 0x1ee   :  { %v192_v16 = vadd.f32 %v218_v14, %v191_v15  ;;  %v242_v17 = vpop.f32.mrb[1].mxu1 }
 0x1ef   :  { %v194_v18 = vpop.f32.mrb[2].mxu1 }
 0x1f0   :  { %197 = vst [vmem:[#allocation8] sm:$0xff] %v192_v16  ;;  %v243_v19 = vpop.f32.mrb[3].mxu1 }
 0x1f1   :  { %333 = shalt.err (!%p330_p0)
}
 0x1f2   :  { %s334_s4 = scalar_lea.hbm %s453_s5, 128 }
 0x1f3   :  { %p335_p1 = scmp.ne.s32.totalorder %s453_s5, %s334_s4  ;;  %p338_p2 = scmp.lt.u32.totalorder %s334_s4, %s453_s5 }
 0x1f5   :  { %p340_p3 = pnand %p338_p2, %p335_p1 }
 0x1f7   :  { %343 = shalt.err (!%p340_p3)
}
 0x1f8   :  { %207 = dma.vmem_to_hbm [thread:$0]  %s205_s8, 128, %s453_s5, [#allocation4]  }
 0x1f9   :  { %348 = dma.done.wait [#allocation4], 128  }
 0x1fa   :  { %349 = vsyncadd [#allocation4], 4294967168 }
 0x1fb   :  { %211 = vsyncpa [#allocation3], 1 }
 0x1fc   :  { %212 = vsyncpa [#allocation6], 1 }
 0x1fd   :  { %213 = vsyncpa [#allocation4], 1 }

</bundles_post_ra>
